<compile_context>
chip_gen: v6e
topology: v6e:2x2x1
jax: 0.10.0
libtpu: 0.0.40
codegen_flags: <defaults>
</compile_context>

<pallas_src>
import functools

import jax
import jax.numpy as jnp
from jax.experimental import pallas as pl
from jax.experimental.pallas import tpu as pltpu


def _round_up(a, b):
    return (a + b - 1) // b * b


def _cdiv(a, b):
    return (a + b - 1) // b


def _erf_gelu(x):
    # Exact (erf-based) GELU, matching torch.nn.functional.gelu default.
    return 0.5 * x * (1.0 + jax.lax.erf(x * (1.0 / jnp.sqrt(2.0).astype(x.dtype))))


# ----------------------------------------------------------------------------
# Kernel
# ----------------------------------------------------------------------------
def ffn_kernel(x_ref, w1_ref, b1_ref, w2_ref, b2_ref, o_ref, acc_ref):
    # x_ref:  (tm, hid_p)    w1_ref: (hid_p, tn)   b1_ref: (1, tn)
    # w2_ref: (tn, hid_p)    b2_ref: (1, hid_p)    o_ref:  (tm, hid_p)
    # acc_ref: (tm, hid_p) f32 scratch accumulating over the int_dim (k) axis.
    k = pl.program_id(1)

    @pl.when(k == 0)
    def _():
        acc_ref[...] = jnp.zeros_like(acc_ref)

    # First matmul (MXU, f32 accumulation), bias + GELU in f32.
    h = jnp.dot(x_ref[...], w1_ref[...], preferred_element_type=jnp.float32)
    h = _erf_gelu(h + b1_ref[...])
    # Second matmul: activation cast back to the matmul dtype (keeps bf16 MXU
    # throughput on the bf16 path); accumulate in f32 across k tiles.
    acc_ref[...] += jnp.dot(h.astype(w2_ref.dtype), w2_ref[...],
                            preferred_element_type=jnp.float32)

    @pl.when(k == pl.num_programs(1) - 1)
    def _():
        # dropout: identity in eval mode.
        o_ref[...] = (acc_ref[...] + b2_ref[...]).astype(o_ref.dtype)


# ----------------------------------------------------------------------------
# Hardware detection and tile selection
# ----------------------------------------------------------------------------
def _tpu_caps():
    """Return (device_kind lowercase string, physical per-core VMEM bytes)."""
    kind = ""
    try:
        kind = jax.devices()[0].device_kind.lower()
    except Exception:
        pass
    vmem = None
    try:
        vmem = int(pltpu.get_tpu_info().vmem_capacity_bytes)
    except Exception:
        vmem = None
    if vmem is None or vmem <= 0:
        vmem = 64 * 2**20 if "v7" in kind else 128 * 2**20
    return kind, vmem


def _gen_defaults(kind):
    """(target_tm, row_align, has_two_tensorcores) per TPU generation."""
    if "v7" in kind:
        return 512, 256, True      # 64 MiB VMEM, 2 TCs, needs ~310 F/B (bf16)
    if "v6" in kind:
        return 1024, 256, False    # needs ~650 F/B (bf16) to be MXU-bound
    return 512, 128, False         # v5e / v5p / unknown


def _choose_tiles(m, hid_p, int_p, mm_isz, out_isz, kind, vmem_cap,
                  user_tm=None, user_tn=None):
    """Pick (tm, tn) and return (tm, tn, vmem_estimate, vmem_cap_effective)."""
    target_tm, align, multi_tc = _gen_defaults(kind)
    # Leave headroom below physical VMEM: 56 MiB on v7x, 100 MiB on 128 MiB parts.
    cap = min(vmem_cap - 8 * 2**20, 100 * 2**20)

    # tn candidates: multiples of 128 that divide int_p -> never jnp.pad weights
    # beyond the 128 alignment pad.
    n128 = int_p // 128
    divs = sorted(d * 128 for d in range(1, n128 + 1) if n128 % d == 0)

    def vmem_est(tm, tn):
        return (2 * tm * hid_p * mm_isz        # x tile (double-buffered)
                + 2 * tm * hid_p * out_isz     # out tile
                + 2 * hid_p * tn * mm_isz      # W1 k-slab
                + 2 * tn * hid_p * mm_isz      # W2 k-slab
                + 2 * 8 * tn * 4               # b1 (sublane-padded)
                + 2 * 8 * hid_p * 4            # b2
                + tm * hid_p * 4               # f32 accumulator scratch
                + tm * tn * 4                  # f32 intermediate h
                + 4 * 2**20)                   # Mosaic internal-scratch allowance

    # --- row tile ---
    if user_tm is not None:
        tm = max(8, _round_up(int(user_tm), 8))
        allow_tm_shrink = False
    else:
        tm = min(target_tm, _round_up(m, 8))
        if tm >= align:
            tm = max(align, (tm // align) * align)   # MXU-friendly multiple
        # Keep >= 2 row tiles when this chip has 2 TensorCores (megacore).
        if multi_tc and m > 16 and _cdiv(m, tm) < 2:
            tm = max(8, _round_up(_cdiv(m, 2), 8))
        allow_tm_shrink = True

    # --- intermediate (k) tile ---
    if user_tn is not None:
        want = max(128, _round_up(int(user_tn), 128))
        tn = max(d for d in divs if d <= want)
    else:
        tn = None
        while tn is None:
            if vmem_est(tm, int_p) <= cap:
                tn = int_p                      # weights resident: single k step
            else:
                fitting = [d for d in divs if d <= 1024 and vmem_est(tm, d) <= cap]
                if fitting:
                    tn = max(fitting)
                elif allow_tm_shrink and tm > 8:
                    tm = max(8, _round_up(tm // 2, 8))   # rows too big; shrink
                else:
                    tn = divs[0]                # last resort (128)

    return tm, tn, vmem_est(tm, tn), cap


# ----------------------------------------------------------------------------
# Wrapper
# ----------------------------------------------------------------------------
@functools.partial(jax.jit, static_argnames=("mxu_dtype", "tm", "tn"))
def feed_forward(x, w1, b1, w2, b2, *, mxu_dtype=None, tm=None, tn=None):
    """Transformer FFN: dropout(linear2(gelu(linear1(x)))), dropout in eval mode.

    mxu_dtype: optional dtype (e.g. jnp.bfloat16) for the two matmuls; the
      accumulation stays f32 and the output dtype is x.dtype.  Default None
      keeps the input dtype end-to-end (exact torch-f32 numerics).
    """
    orig_shape = x.shape
    orig_dtype = x.dtype
    hid = orig_shape[-1]
    int_dim = w1.shape[1]

    mm_dtype = jnp.dtype(mxu_dtype) if mxu_dtype is not None else jnp.dtype(orig_dtype)
    mm_isz = mm_dtype.itemsize
    out_isz = jnp.dtype(orig_dtype).itemsize

    x2 = x.reshape(-1, hid)
    m = x2.shape[0]

    hid_p = _round_up(hid, 128)    # lane-dense weight cols / output lanes
    int_p = _round_up(int_dim, 128)

    kind, vmem_cap = _tpu_caps()
    tm, tn, vmem_est, cap = _choose_tiles(m, hid_p, int_p, mm_isz, out_isz,
                                          kind, vmem_cap, tm, tn)
    m_pad = _round_up(m, tm)
    grid_i = m_pad // tm
    k_steps = int_p // tn

    # Cast matmul operands (opt-in bf16 MXU path); biases stay in their own
    # dtype and are added onto the f32 accumulator inside the kernel.
    if x2.dtype != mm_dtype:
        x2 = x2.astype(mm_dtype)
    if w1.dtype != mm_dtype:
        w1 = w1.astype(mm_dtype)
    if w2.dtype != mm_dtype:
        w2 = w2.astype(mm_dtype)

    # Zero-pad to 128-lane / tm-row boundaries only (no-op for real model dims;
    # tn divides int_p so no extra per-call weight-tile padding is introduced).
    if m_pad != m or hid_p != hid:
        x2 = jnp.pad(x2, ((0, m_pad - m), (0, hid_p - hid)))
    if hid_p != hid or int_p != int_dim:
        w1 = jnp.pad(w1, ((0, hid_p - hid), (0, int_p - int_dim)))
        w2 = jnp.pad(w2, ((0, int_p - int_dim), (0, hid_p - hid)))
    if int_p != int_dim:
        b1 = jnp.pad(b1, (0, int_p - int_dim))
    if hid_p != hid:
        b2 = jnp.pad(b2, (0, hid_p - hid))
    b1_2d = b1.reshape(1, int_p)
    b2_2d = b2.reshape(1, hid_p)

    vmem_limit = int(min(cap, max(32 * 2**20, int(vmem_est * 1.2))))

    # Weights stream from HBM once total when k_steps == 1 (grid-constant
    # blocks), otherwise once per row tile.
    weight_passes = 1 if k_steps == 1 else grid_i
    bias_isz = jnp.dtype(b1_2d.dtype).itemsize
    cost = pl.CostEstimate(
        flops=4 * m_pad * hid_p * int_p,                 # two matmuls
        transcendentals=m_pad * int_p,                   # erf in GELU
        bytes_accessed=int(m_pad * hid_p * (mm_isz + out_isz)
                           + weight_passes * 2 * hid_p * int_p * mm_isz
                           + (int_p + hid_p) * bias_isz),
    )

    out = pl.pallas_call(
        ffn_kernel,
        out_shape=jax.ShapeDtypeStruct((m_pad, hid_p), orig_dtype),
        grid_spec=pltpu.PrefetchScalarGridSpec(
            num_scalar_prefetch=0,
            grid=(grid_i, k_steps),
            in_specs=[
                pl.BlockSpec((tm, hid_p), lambda i, k: (i, 0)),   # x row tile
                pl.BlockSpec((hid_p, tn), lambda i, k: (0, k)),   # W1 k-slab
                pl.BlockSpec((1, tn), lambda i, k: (0, k)),       # b1 k-slab
                pl.BlockSpec((tn, hid_p), lambda i, k: (k, 0)),   # W2 k-slab
                pl.BlockSpec((1, hid_p), lambda i, k: (0, 0)),    # b2
            ],
            out_specs=pl.BlockSpec((tm, hid_p), lambda i, k: (i, 0)),
            scratch_shapes=[pltpu.VMEM((tm, hid_p), jnp.float32)],
        ),
        compiler_params=pltpu.CompilerParams(
            dimension_semantics=("parallel", "arbitrary"),
            vmem_limit_bytes=vmem_limit,
        ),
        cost_estimate=cost,
    )(x2, w1, b1_2d, w2, b2_2d)

    return out[:m, :hid].reshape(orig_shape)


# ----------------------------------------------------------------------------
# Parameter init (mimics nn.Linear: uniform +/- 1/sqrt(fan_in))
# ----------------------------------------------------------------------------
def init_params(key, hid_dim, int_dim, dtype=jnp.float32):
    k1, k2, k3, k4 = jax.random.split(key, 4)
    lim1 = 1.0 / jnp.sqrt(hid_dim)
    lim2 = 1.0 / jnp.sqrt(int_dim)
    w1 = jax.random.uniform(k1, (hid_dim, int_dim), dtype, -lim1, lim1)
    b1 = jax.random.uniform(k2, (int_dim,), dtype, -lim1, lim1)
    w2 = jax.random.uniform(k3, (int_dim, hid_dim), dtype, -lim2, lim2)
    b2 = jax.random.uniform(k4, (hid_dim,), dtype, -lim2, lim2)
    return w1, b1, w2, b2


if __name__ == "__main__":
    batch, seq, hid_dim, int_dim = 2, 8, 32, 64
    key = jax.random.PRNGKey(0)
    kx, kp = jax.random.split(key)
    x = jax.random.normal(kx, (batch, seq, hid_dim), jnp.float32)
    w1, b1, w2, b2 = init_params(kp, hid_dim, int_dim)

    # Exact (f32) path — matches torch eval-mode FeedForward.
    y = jax.block_until_ready(feed_forward(x, w1, b1, w2, b2))

    # Reference in plain JAX (eval-mode dropout = identity, exact erf GELU).
    h_ref = x @ w1 + b1
    h_ref = 0.5 * h_ref * (1.0 + jax.lax.erf(h_ref / jnp.sqrt(2.0)))
    y_ref = h_ref @ w2 + b2
    assert y.shape == x.shape
    assert jnp.allclose(y, y_ref, atol=1e-5, rtol=1e-5), "mismatch vs reference (f32 path)"

    # Opt-in bf16 MXU path (documented precision change): looser tolerance.
    y_bf = jax.block_until_ready(
        feed_forward(x, w1, b1, w2, b2, mxu_dtype=jnp.bfloat16))
    assert y_bf.shape == x.shape
    assert jnp.allclose(y_bf, y_ref, atol=5e-2, rtol=5e-2), "mismatch vs reference (bf16 path)"

    print("KERNEL_OK")
</pallas_src>

<mosaic_0001>
module attributes {stable_mosaic.version = 11 : i64} {
  func.func @ffn_kernel(%arg0: i32, %arg1: i32, %arg2: memref<16x128xf32, #tpu.memory_space<vmem>>, %arg3: memref<128x128xf32, #tpu.memory_space<vmem>>, %arg4: memref<1x128xf32, #tpu.memory_space<vmem>>, %arg5: memref<128x128xf32, #tpu.memory_space<vmem>>, %arg6: memref<1x128xf32, #tpu.memory_space<vmem>>, %arg7: memref<16x128xf32, #tpu.memory_space<vmem>>, %arg8: memref<16x128xf32, #tpu.memory_space<vmem>>) attributes {dimension_semantics = [#tpu.dimension_semantics<parallel>, #tpu.dimension_semantics<arbitrary>], iteration_bounds = array<i64: 1, 1>, scalar_prefetch = 0 : i64, scratch_operands = 1 : i64, tpu.core_type = #tpu.core_type<tc>, window_params = [{transform_indices = @transform_0, window_bounds = array<i64: 16, 128>}, {transform_indices = @transform_1, window_bounds = array<i64: 128, 128>}, {transform_indices = @transform_2, window_bounds = array<i64: 1, 128>}, {transform_indices = @transform_3, window_bounds = array<i64: 128, 128>}, {pipeline_mode = #tpu.pipeline_mode<synchronous>, transform_indices = @transform_4, window_bounds = array<i64: 1, 128>}, {transform_indices = @transform_5, window_bounds = array<i64: 16, 128>}]} {
    %c0_i32 = arith.constant 0 : i32
    %0 = arith.cmpi eq, %arg1, %c0_i32 : i32
    %1 = arith.extui %0 : i1 to i32
    %c0_i32_0 = arith.constant 0 : i32
    %2 = arith.cmpi ne, %1, %c0_i32_0 : i32
    scf.if %2 {
      %cst_19 = arith.constant 0.000000e+00 : f32
      %27 = vector.broadcast %cst_19 : f32 to vector<16x128xf32>
      %c0_20 = arith.constant 0 : index
      %c0_21 = arith.constant 0 : index
      %28 = vector.load %arg8[%c0_20, %c0_21] : memref<16x128xf32, #tpu.memory_space<vmem>>, vector<16x128xf32>
      tpu.vector_store %arg8[%c0_20, %c0_21], %27 {strides = array<i32>} : memref<16x128xf32, #tpu.memory_space<vmem>>, vector<16x128xf32>,
    } else {
    }
    %c0 = arith.constant 0 : index
    %c0_1 = arith.constant 0 : index
    %3 = vector.load %arg2[%c0, %c0_1] : memref<16x128xf32, #tpu.memory_space<vmem>>, vector<16x128xf32>
    %c0_2 = arith.constant 0 : index
    %c0_3 = arith.constant 0 : index
    %4 = vector.load %arg3[%c0_2, %c0_3] : memref<128x128xf32, #tpu.memory_space<vmem>>, vector<128x128xf32>
    %cst = arith.constant dense<0.000000e+00> : vector<16x128xf32>
    %5 = tpu.matmul %3, %4, %cst {dimension_numbers = #tpu.dot_dimension_numbers<[1], [0], [0], [1], [0, 0, 1, 1], [], []>} : vector<16x128xf32>, vector<128x128xf32>, vector<16x128xf32> -> vector<16x128xf32>
    %c0_4 = arith.constant 0 : index
    %c0_5 = arith.constant 0 : index
    %6 = vector.load %arg4[%c0_4, %c0_5] : memref<1x128xf32, #tpu.memory_space<vmem>>, vector<1x128xf32>
    %7 = vector.broadcast %6 : vector<1x128xf32> to vector<16x128xf32>
    %8 = arith.addf %5, %7 : vector<16x128xf32>
    %cst_6 = arith.constant 5.000000e-01 : f32
    %9 = vector.broadcast %cst_6 : f32 to vector<16x128xf32>
    %10 = arith.mulf %9, %8 : vector<16x128xf32>
    %cst_7 = arith.constant 2.000000e+00 : f32
    %11 = math.sqrt %cst_7 : f32
    %cst_8 = arith.constant 1.000000e+00 : f32
    %12 = arith.divf %cst_8, %11 : f32
    %13 = vector.broadcast %12 : f32 to vector<16x128xf32>
    %14 = arith.mulf %8, %13 : vector<16x128xf32>
    %15 = math.erf %14 : vector<16x128xf32>
    %cst_9 = arith.constant 1.000000e+00 : f32
    %16 = vector.broadcast %cst_9 : f32 to vector<16x128xf32>
    %17 = arith.addf %16, %15 : vector<16x128xf32>
    %18 = arith.mulf %10, %17 : vector<16x128xf32>
    %c0_10 = arith.constant 0 : index
    %c0_11 = arith.constant 0 : index
    %19 = vector.load %arg8[%c0_10, %c0_11] : memref<16x128xf32, #tpu.memory_space<vmem>>, vector<16x128xf32>
    %c0_12 = arith.constant 0 : index
    %c0_13 = arith.constant 0 : index
    %20 = vector.load %arg5[%c0_12, %c0_13] : memref<128x128xf32, #tpu.memory_space<vmem>>, vector<128x128xf32>
    %cst_14 = arith.constant dense<0.000000e+00> : vector<16x128xf32>
    %21 = tpu.matmul %18, %20, %cst_14 {dimension_numbers = #tpu.dot_dimension_numbers<[1], [0], [0], [1], [0, 0, 1, 1], [], []>} : vector<16x128xf32>, vector<128x128xf32>, vector<16x128xf32> -> vector<16x128xf32>
    %22 = arith.addf %19, %21 : vector<16x128xf32>
    %c0_15 = arith.constant 0 : index
    %c0_16 = arith.constant 0 : index
    %23 = vector.load %arg8[%c0_15, %c0_16] : memref<16x128xf32, #tpu.memory_space<vmem>>, vector<16x128xf32>
    tpu.vector_store %arg8[%c0_15, %c0_16], %22 {strides = array<i32>} : memref<16x128xf32, #tpu.memory_space<vmem>>, vector<16x128xf32>,
    %c0_i32_17 = arith.constant 0 : i32
    %24 = arith.cmpi eq, %arg1, %c0_i32_17 : i32
    %25 = arith.extui %24 : i1 to i32
    %c0_i32_18 = arith.constant 0 : i32
    %26 = arith.cmpi ne, %25, %c0_i32_18 : i32
    scf.if %26 {
      %c0_19 = arith.constant 0 : index
      %c0_20 = arith.constant 0 : index
      %27 = vector.load %arg8[%c0_19, %c0_20] : memref<16x128xf32, #tpu.memory_space<vmem>>, vector<16x128xf32>
      %c0_21 = arith.constant 0 : index
      %c0_22 = arith.constant 0 : index
      %28 = vector.load %arg6[%c0_21, %c0_22] : memref<1x128xf32, #tpu.memory_space<vmem>>, vector<1x128xf32>
      %29 = vector.broadcast %28 : vector<1x128xf32> to vector<16x128xf32>
      %30 = arith.addf %27, %29 : vector<16x128xf32>
      %c0_23 = arith.constant 0 : index
      %c0_24 = arith.constant 0 : index
      %31 = vector.load %arg7[%c0_23, %c0_24] : memref<16x128xf32, #tpu.memory_space<vmem>>, vector<16x128xf32>
      tpu.vector_store %arg7[%c0_23, %c0_24], %30 {strides = array<i32>} : memref<16x128xf32, #tpu.memory_space<vmem>>, vector<16x128xf32>,
    } else {
    }
    return
  }
  func.func @transform_0(%arg0: i32, %arg1: i32) -> (i32, i32) {
    %c0_i32 = arith.constant 0 : i32
    %c0_i32_0 = arith.constant 0 : i32
    return %arg0, %c0_i32 : i32, i32
  }
  func.func @transform_1(%arg0: i32, %arg1: i32) -> (i32, i32) {
    %c0_i32 = arith.constant 0 : i32
    %c0_i32_0 = arith.constant 0 : i32
    return %c0_i32, %arg1 : i32, i32
  }
  func.func @transform_2(%arg0: i32, %arg1: i32) -> (i32, i32) {
    %c0_i32 = arith.constant 0 : i32
    %c0_i32_0 = arith.constant 0 : i32
    return %c0_i32, %arg1 : i32, i32
  }
  func.func @transform_3(%arg0: i32, %arg1: i32) -> (i32, i32) {
    %c0_i32 = arith.constant 0 : i32
    %c0_i32_0 = arith.constant 0 : i32
    return %arg1, %c0_i32 : i32, i32
  }
  func.func @transform_4(%arg0: i32, %arg1: i32) -> (i32, i32) {
    %c0_i32 = arith.constant 0 : i32
    %c0_i32_0 = arith.constant 0 : i32
    %c0_i32_1 = arith.constant 0 : i32
    return %c0_i32, %c0_i32_0 : i32, i32
  }
  func.func @transform_5(%arg0: i32, %arg1: i32) -> (i32, i32) {
    %c0_i32 = arith.constant 0 : i32
    %c0_i32_0 = arith.constant 0 : i32
    return %arg0, %c0_i32 : i32, i32
  }
}

</mosaic_0001>

<bundles_post_ra>
// kernel: feed_forward.1
= control target key start
LH: loop header
LB: loop body
LE: loop exit
PB: predicated region body
PF: predicated region fallthrough
CT: control target
= control target key end

     0   :  { %s509_s1 = inlined_call_operand.vmem [shape: f32[128,128], index: 1, kind: input, shape index: {}]   ;;  %s510_s0 = inlined_call_operand.vmem [shape: f32[16,128], index: 0, kind: input, shape index: {}]   ;;  %s511_s3 = inlined_call_operand.vmem [shape: f32[128,128], index: 3, kind: input, shape index: {}]   ;;  %s512_s2 = inlined_call_operand.vmem [shape: f32[1,128], index: 2, kind: input, shape index: {}]   ;;  %s513_s4 = inlined_call_operand.vmem [shape: f32[1,128], index: 4, kind: input, shape index: {}]   ;;  %s514_s5 = inlined_call_operand.vmem [shape: f32[16,128], index: 5, kind: output, shape index: {}]  }
   0x1   :  { %v43_v0 = vld [vmem:[%s509_s1 + $0x78] sm:$0xff]  ;;  %v42_v1 = vld [vmem:[%s509_s1 + $0x70] sm:$0xff]  ;;  %v41_v2 = vld [vmem:[%s509_s1 + $0x68] sm:$0xff] }
   0x2   :  { %291 = vmatprep.subr.mxu0 %v43_v0  ;;  %v40_v3 = vld [vmem:[%s509_s1 + $0x60] sm:$0xff]  ;;  %v39_v5 = vld [vmem:[%s509_s1 + $0x58] sm:$0xff]  ;;  %v152_v7 = vld [vmem:[%s511_s3 + $0x70] sm:$0xff] }
   0x3   :  { %292 = vmatpush3.msra.mxu0 %v43_v0  ;;  %v26_v4 = vld [vmem:[%s510_s0] sm:$0xff]  ;;  %v153_v6 = vld [vmem:[%s511_s3 + $0x78] sm:$0xff]  ;;  %v38_v8 = vld [vmem:[%s509_s1 + $0x50] sm:$0xff] }
   0x4   :  { %293 = vmatprep.subr.mxu0 %v42_v1  ;;  %323 = vmatprep.mubr.f32.mxu0 %v26_v4  ;;  %v151_v9 = vld [vmem:[%s511_s3 + $0x68] sm:$0xff]  ;;  %v36_v11 = vld [vmem:[%s509_s1 + $0x40] sm:$0xff]  ;;  %v35_v12 = vld [vmem:[%s509_s1 + $0x38] sm:$0xff] }
   0x5   :  { %294 = vmatpush3.msra.mxu0 %v42_v1  ;;  %326 = vmatprep.subr.mxu1 %v153_v6  ;;  %v37_v10 = vld [vmem:[%s509_s1 + $0x48] sm:$0xff]  ;;  %v34_v13 = vld [vmem:[%s509_s1 + $0x30] sm:$0xff]  ;;  %v32_v15 = vld [vmem:[%s509_s1 + $0x20] sm:$0xff] }
   0x6   :  { %295 = vmatprep.subr.mxu0 %v41_v2  ;;  %327 = vmatpush3.msra.mxu1 %v153_v6  ;;  %v33_v14 = vld [vmem:[%s509_s1 + $0x28] sm:$0xff]  ;;  %v31_v16 = vld [vmem:[%s509_s1 + $0x18] sm:$0xff]  ;;  %v30_v17 = vld [vmem:[%s509_s1 + $0x10] sm:$0xff] }
   0x7   :  { %296 = vmatpush3.msra.mxu0 %v41_v2  ;;  %328 = vmatprep.subr.mxu1 %v152_v7  ;;  %v29_v18 = vld [vmem:[%s509_s1 + $0x8] sm:$0xff]  ;;  %v28_v19 = vld [vmem:[%s509_s1] sm:$0xff]  ;;  %v149_v22 = vld [vmem:[%s511_s3 + $0x58] sm:$0xff] }
   0x8   :  { %297 = vmatprep.subr.mxu0 %v40_v3  ;;  %329 = vmatpush3.msra.mxu1 %v152_v7  ;;  %v27_v20 = vld [vmem:[%s510_s0 + $0x8] sm:$0xff]  ;;  %v150_v21 = vld [vmem:[%s511_s3 + $0x60] sm:$0xff]  ;;  %v148_v23 = vld [vmem:[%s511_s3 + $0x50] sm:$0xff] }
   0x9   :  { %298 = vmatpush3.msra.mxu0 %v40_v3  ;;  %330 = vmatprep.subr.mxu1 %v151_v9  ;;  %v147_v24 = vld [vmem:[%s511_s3 + $0x48] sm:$0xff]  ;;  %v146_v25 = vld [vmem:[%s511_s3 + $0x40] sm:$0xff]  ;;  %v145_v26 = vld [vmem:[%s511_s3 + $0x38] sm:$0xff] }
   0xa   :  { %299 = vmatprep.subr.mxu0 %v39_v5  ;;  %331 = vmatpush3.msra.mxu1 %v151_v9  ;;  %v144_v27 = vld [vmem:[%s511_s3 + $0x30] sm:$0xff]  ;;  %v143_v28 = vld [vmem:[%s511_s3 + $0x28] sm:$0xff]  ;;  %v142_v29 = vld [vmem:[%s511_s3 + $0x20] sm:$0xff] }
   0xb   :  { %300 = vmatpush3.msra.mxu0 %v39_v5  ;;  %332 = vmatprep.subr.mxu1 %v150_v21  ;;  %v141_v30 = vld [vmem:[%s511_s3 + $0x18] sm:$0xff]  ;;  %v140_v31 = vld [vmem:[%s511_s3 + $0x10] sm:$0xff]  ;;  %v139_v32 = vld [vmem:[%s511_s3 + $0x8] sm:$0xff] }
   0xc   :  { %301 = vmatprep.subr.mxu0 %v38_v8  ;;  %333 = vmatpush3.msra.mxu1 %v150_v21  ;;  %v138_v33 = vld [vmem:[%s511_s3] sm:$0xff] }
   0xd   :  { %302 = vmatpush3.msra.mxu0 %v38_v8  ;;  %334 = vmatprep.subr.mxu1 %v149_v22  ;;  %v253_v34 = vld [vmem:[%s512_s2] ss:$0 sm:$0xff] }
   0xe   :  { %303 = vmatprep.subr.mxu0 %v37_v10  ;;  %335 = vmatpush3.msra.mxu1 %v149_v22  ;;  %v254_v49 = vld [vmem:[%s513_s4] ss:$0 sm:$0xff] }
   0xf   :  { %304 = vmatpush3.msra.mxu0 %v37_v10  ;;  %336 = vmatprep.subr.mxu1 %v148_v23 }
  0x10   :  { %305 = vmatprep.subr.mxu0 %v36_v11  ;;  %337 = vmatpush3.msra.mxu1 %v148_v23 }
  0x11   :  { %306 = vmatpush3.msra.mxu0 %v36_v11  ;;  %338 = vmatprep.subr.mxu1 %v147_v24 }
  0x12   :  { %307 = vmatprep.subr.mxu0 %v35_v12  ;;  %339 = vmatpush3.msra.mxu1 %v147_v24 }
  0x13   :  { %308 = vmatpush3.msra.mxu0 %v35_v12  ;;  %340 = vmatprep.subr.mxu1 %v146_v25 }
  0x14   :  { %309 = vmatprep.subr.mxu0 %v34_v13  ;;  %341 = vmatpush3.msra.mxu1 %v146_v25 }
  0x15   :  { %310 = vmatpush3.msra.mxu0 %v34_v13  ;;  %342 = vmatprep.subr.mxu1 %v145_v26 }
  0x16   :  { %311 = vmatprep.subr.mxu0 %v33_v14  ;;  %343 = vmatpush3.msra.mxu1 %v145_v26 }
  0x17   :  { %312 = vmatpush3.msra.mxu0 %v33_v14  ;;  %344 = vmatprep.subr.mxu1 %v144_v27 }
  0x18   :  { %313 = vmatprep.subr.mxu0 %v32_v15  ;;  %345 = vmatpush3.msra.mxu1 %v144_v27 }
  0x19   :  { %314 = vmatpush3.msra.mxu0 %v32_v15  ;;  %346 = vmatprep.subr.mxu1 %v143_v28 }
  0x1a   :  { %315 = vmatprep.subr.mxu0 %v31_v16  ;;  %347 = vmatpush3.msra.mxu1 %v143_v28 }
  0x1b   :  { %316 = vmatpush3.msra.mxu0 %v31_v16  ;;  %348 = vmatprep.subr.mxu1 %v142_v29 }
  0x1c   :  { %317 = vmatprep.subr.mxu0 %v30_v17  ;;  %349 = vmatpush3.msra.mxu1 %v142_v29 }
  0x1d   :  { %318 = vmatpush3.msra.mxu0 %v30_v17  ;;  %350 = vmatprep.subr.mxu1 %v141_v30 }
  0x1e   :  { %319 = vmatprep.subr.mxu0 %v29_v18  ;;  %351 = vmatpush3.msra.mxu1 %v141_v30 }
  0x1f   :  { %320 = vmatpush3.msra.mxu0 %v29_v18  ;;  %352 = vmatprep.subr.mxu1 %v140_v31 }
  0x20   :  { %321 = vmatprep.subr.mxu0 %v28_v19  ;;  %353 = vmatpush3.msra.mxu1 %v140_v31 }
  0x21   :  { %322 = vmatpush3.msra.mxu0 %v28_v19  ;;  %354 = vmatprep.subr.mxu1 %v139_v32 }
  0x22   :  { %324 = vmatmul.mubr.f32.vlgmr.msra.gmra.mxu0 %v27_v20  ;;  %355 = vmatpush3.msra.mxu1 %v139_v32 }
  0x23   :  { %356 = vmatprep.subr.mxu1 %v138_v33 }
  0x24   :  { %357 = vmatpush3.msra.mxu1 %v138_v33 }
  0xe2   :  { %v325_v35 = vpop.f32.mrf.mxu0 }
  0xe3   :  { %v123_v36 = vadd.f32 %v325_v35, %v253_v34 }
  0xe4   :  { %v117_v37 = vpop.f32.mrf.mxu0 }
  0xe5   :  { %v129_v38 = vmul.f32 0.70710677, %v123_v36  ;;  %v118_v39 = vadd.f32 %v253_v34, %v117_v37  ;;  %v127_v46 = vmul.f32 0.5, %v123_v36 }
  0xe7   :  { %361 = verf.f32 %v129_v38  ;;  %v128_v40 = vmul.f32 0.70710677, %v118_v39  ;;  %v126_v44 = vmul.f32 0.5, %v118_v39 }
  0xe9   :  { %363 = verf.f32 %v128_v40 }
  0xf4   :  { %v362_v41 = vpop.eup %361 }
  0xf5   :  { %v133_v43 = vadd.f32 1.0, %v362_v41 }
  0xf6   :  { %v364_v42 = vpop.eup %363 }
  0xf7   :  { %v132_v45 = vadd.f32 1.0, %v364_v42  ;;  %v135_v48 = vmul.f32 %v133_v43, %v127_v46 }
  0xf9   :  { %v134_v47 = vmul.f32 %v132_v45, %v126_v44 }
  0xfb   :  { %358 = vmatprep.mubr.f32.mxu1 %v134_v47 }
  0xfc   :  { %359 = vmatmul.mubr.f32.vlgmr.msra.gmra.mxu1 %v135_v48 }
 0x1bc   :  { %v360_v50 = vpop.f32.mrf.mxu1 }
 0x1bd   :  { %v246_v51 = vadd.f32 %v360_v50, %v254_v49 }
 0x1be   :  { %v220_v52 = vpop.f32.mrf.mxu1 }
 0x1bf   :  { %248 = vst [vmem:[%s514_s5 + $0x8] sm:$0xff] %v246_v51  ;;  %v245_v53 = vadd.f32 %v254_v49, %v220_v52 }
 0x1c1   :  { %247 = vst [vmem:[%s514_s5] sm:$0xff] %v245_v53 }

</bundles_post_ra>
